<compile_context>
chip_gen: v5e
topology: v5e:2x2
jax: 0.10.0
libtpu: 0.0.40
codegen_flags: <defaults>
</compile_context>

<pallas_src>
import functools

import jax
import jax.numpy as jnp
from jax.experimental import pallas as pl
from jax.experimental.pallas import tpu as pltpu


def _text_lstm_kernel(ids_ref, wcomb_ref, b_ref, wdec_ref, bdec_ref,
                      h0_ref, c0_ref,
                      logits_ref, h_out_ref, c_out_ref,
                      h_sc, c_sc):
    """One LSTM decode step per grid iteration.

    Weights (wcomb/b/wdec/bdec) use constant index_maps -> VMEM resident across
    the whole grid.  h/c live in f32 VMEM scratch and carry across steps.
    """
    t = pl.program_id(0)
    B, H = h_sc.shape
    v_pad = wcomb_ref.shape[0] - H          # padded vocab rows of the EW block

    # --- step 0: load the caller's initial hidden state into scratch --------
    @pl.when(t == 0)
    def _():
        h_sc[...] = h0_ref[...]
        c_sc[...] = c0_ref[...]

    # --- fused embedding gather + both gate matmuls: one MXU op -------------
    # gates = onehot(ids) @ (emb @ Wih^T)  +  h @ Whh^T  +  (b_ih + b_hh)
    #       = [onehot | h_bf16] @ [EW ; Whh^T] + b
    ids = ids_ref[0]                                                # (B, 1) i32
    vocab_iota = jax.lax.broadcasted_iota(jnp.int32, (B, v_pad), 1)
    onehot = (vocab_iota == ids).astype(jnp.bfloat16)               # exact 0/1
    xh = jnp.concatenate([onehot, h_sc[...].astype(jnp.bfloat16)], axis=-1)
    gates = (jnp.dot(xh, wcomb_ref[...],
                     preferred_element_type=jnp.float32)
             + b_ref[...])                                          # (B, 4H) f32

    # --- single full-vreg sigmoid pass (tanh(x) = 2*sigmoid(2x) - 1) --------
    # PyTorch gate order along 4H: [i, f, g, o]; only g uses tanh.
    lane = jax.lax.broadcasted_iota(jnp.int32, gates.shape, 1)
    is_g = (lane >= 2 * H) & (lane < 3 * H)
    s = jax.nn.sigmoid(jnp.where(is_g, 2.0 * gates, gates))
    act = jnp.where(is_g, 2.0 * s - 1.0, s)

    i_g = act[:, 0 * H:1 * H]
    f_g = act[:, 1 * H:2 * H]
    g_g = act[:, 2 * H:3 * H]
    o_g = act[:, 3 * H:4 * H]

    c1 = f_g * c_sc[...] + i_g * g_g                                # f32
    h1 = o_g * jnp.tanh(c1)                                         # f32
    c_sc[...] = c1
    h_sc[...] = h1

    # --- decoder: lane-dense (B, 128) logits slab, one unmasked store -------
    logits_ref[...] = (jnp.dot(h1.astype(jnp.bfloat16), wdec_ref[...],
                               preferred_element_type=jnp.float32)
                       + bdec_ref[...])

    # --- final hidden state written exactly (f32, no bf16 matmul round) -----
    @pl.when(t == pl.num_programs(0) - 1)
    def _():
        h_out_ref[...] = h1
        c_out_ref[...] = c1


def prepare_params(params):
    """One-time weight prep (hoisted out of the per-step path).

    * EW = emb @ W_ih^T precomputed in f32, padded on the vocab axis, stacked
      with W_hh^T into a single (Vpad+H, 4H) bf16 matrix -> one matmul/step.
    * LSTM biases fused; decoder weight/bias transposed and padded to a
      128-lane slab so the logits store is unmasked.
    """
    V, H = params["emb"].shape
    O = params["w_dec"].shape[0]
    v_pad = pl.cdiv(V, 128) * 128
    o_pad = pl.cdiv(max(O, 128), 128) * 128

    ew = params["emb"].astype(jnp.float32) @ params["w_ih"].T.astype(jnp.float32)
    ew_pad = jnp.zeros((v_pad, 4 * H), jnp.float32).at[:V].set(ew)
    w_comb = jnp.concatenate([ew_pad, params["w_hh"].T.astype(jnp.float32)],
                             axis=0).astype(jnp.bfloat16)            # (Vpad+H, 4H)

    w_dec_pad = jnp.zeros((H, o_pad), jnp.bfloat16).at[:, :O].set(
        params["w_dec"].T.astype(jnp.bfloat16))                      # (H, Opad)
    b_dec_pad = jnp.zeros((1, o_pad), jnp.float32).at[0, :O].set(
        params["b_dec"].astype(jnp.float32))

    return {
        "w_comb":    w_comb,                                         # bf16
        "b":         (params["b_ih"] + params["b_hh"])
                     .reshape(1, 4 * H).astype(jnp.float32),         # f32
        "w_dec_pad": w_dec_pad,                                      # bf16
        "b_dec_pad": b_dec_pad,                                      # f32
    }


def _run_lstm(ids_tb, h0, c0, prep):
    """Core pallas_call.  ids_tb: (T, B) int32.  Returns (logits_pad, h1, c1)."""
    T, B = ids_tb.shape
    H = h0.shape[-1]
    vph, g4 = prep["w_comb"].shape
    o_pad = prep["w_dec_pad"].shape[1]

    grid_spec = pltpu.PrefetchScalarGridSpec(
        num_scalar_prefetch=0,
        grid=(T,),
        in_specs=[
            pl.BlockSpec((1, B, 1), lambda t: (t, 0, 0)),   # per-step token ids
            pl.BlockSpec((vph, g4), lambda t: (0, 0)),      # [EW ; Whh^T] resident
            pl.BlockSpec((1, g4),   lambda t: (0, 0)),      # fused gate bias
            pl.BlockSpec((H, o_pad), lambda t: (0, 0)),     # decoder weight (padded)
            pl.BlockSpec((1, o_pad), lambda t: (0, 0)),     # decoder bias (padded)
            pl.BlockSpec((B, H),    lambda t: (0, 0)),      # h0
            pl.BlockSpec((B, H),    lambda t: (0, 0)),      # c0
        ],
        out_specs=[
            pl.BlockSpec((B, o_pad), lambda t: (t, 0)),     # per-step logits slab
            pl.BlockSpec((B, H),    lambda t: (0, 0)),      # final h
            pl.BlockSpec((B, H),    lambda t: (0, 0)),      # final c
        ],
        scratch_shapes=[pltpu.VMEM((B, H), jnp.float32),    # carried h
                        pltpu.VMEM((B, H), jnp.float32)],   # carried c
    )

    logits_pad, h1, c1 = pl.pallas_call(
        _text_lstm_kernel,
        grid_spec=grid_spec,
        out_shape=(jax.ShapeDtypeStruct((T * B, o_pad), jnp.float32),
                   jax.ShapeDtypeStruct((B, H), jnp.float32),
                   jax.ShapeDtypeStruct((B, H), jnp.float32)),
        compiler_params=pltpu.CompilerParams(
            dimension_semantics=("arbitrary",)),
    )(ids_tb.reshape(T, B, 1).astype(jnp.int32),
      prep["w_comb"], prep["b"], prep["w_dec_pad"], prep["b_dec_pad"],
      h0.astype(jnp.float32), c0.astype(jnp.float32))

    return logits_pad.reshape(T, B, o_pad), h1, c1


@functools.partial(jax.jit, static_argnames=("out_size",))
def text_lstm_forward(inp, hidden, prep, *, out_size):
    """Mirrors TextLSTM.forward: one token per batch element (T = 1).

    inp: (B,) int32; hidden: (h0, c0) each (1, B, H) f32.
    Returns (logits (B, O), (h1 (1,B,H), c1 (1,B,H))).
    """
    h0, c0 = hidden
    logits, h1, c1 = _run_lstm(inp.reshape(1, -1), h0[0], c0[0], prep)
    return logits[0, :, :out_size], (h1[None], c1[None])


@functools.partial(jax.jit, static_argnames=("out_size",))
def text_lstm_decode(ids, hidden, prep, *, out_size):
    """Multi-step decode in ONE kernel launch: ids (T, B) int32.

    Equivalent to calling forward() T times, feeding the hidden state through.
    Returns (logits (T, B, O), (hT (1,B,H), cT (1,B,H))).
    """
    h0, c0 = hidden
    logits, h1, c1 = _run_lstm(ids, h0[0], c0[0], prep)
    return logits[:, :, :out_size], (h1[None], c1[None])
    # TODO(synk): for large vocabularies, replace the in-kernel one-hot MXU
    # gather with a scalar-prefetch pl.Element row gather of EW from HBM and
    # tile the decoder vocab axis (needed to fit v7x's 64 MiB VMEM).


def init_params(key, vocab_size, lstm_size, output_size):
    """Raw parameters in the PyTorch layout (used by the f32 reference)."""
    ks = jax.random.split(key, 7)
    s = 1.0 / jnp.sqrt(lstm_size)
    return {
        "emb":   jax.random.normal(ks[0], (vocab_size, lstm_size), jnp.float32),
        "w_ih":  jax.random.uniform(ks[1], (4 * lstm_size, lstm_size), jnp.float32, -s, s),
        "w_hh":  jax.random.uniform(ks[2], (4 * lstm_size, lstm_size), jnp.float32, -s, s),
        "b_ih":  jax.random.uniform(ks[3], (4 * lstm_size,), jnp.float32, -s, s),
        "b_hh":  jax.random.uniform(ks[4], (4 * lstm_size,), jnp.float32, -s, s),
        "w_dec": jax.random.uniform(ks[5], (output_size, lstm_size), jnp.float32, -s, s),
        "b_dec": jax.random.uniform(ks[6], (output_size,), jnp.float32, -s, s),
    }


def _reference_forward(inp, hidden, params):
    """Pure-JAX f32 reference of the PyTorch forward (single step)."""
    h0, c0 = hidden
    H = params["emb"].shape[1]
    x = jnp.take(params["emb"], inp, axis=0)
    gates = (x @ params["w_ih"].T + params["b_ih"]
             + h0[0] @ params["w_hh"].T + params["b_hh"])
    i = jax.nn.sigmoid(gates[:, 0 * H:1 * H])
    f = jax.nn.sigmoid(gates[:, 1 * H:2 * H])
    g = jnp.tanh(gates[:, 2 * H:3 * H])
    o = jax.nn.sigmoid(gates[:, 3 * H:4 * H])
    c1 = f * c0[0] + i * g
    h1 = o * jnp.tanh(c1)
    out = h1 @ params["w_dec"].T + params["b_dec"]
    return out, (h1[None], c1[None])


def _reference_decode(ids_tb, hidden, params):
    outs = []
    for t in range(ids_tb.shape[0]):
        o, hidden = _reference_forward(ids_tb[t], hidden, params)
        outs.append(o)
    return jnp.stack(outs), hidden


if __name__ == "__main__":
    VOCAB, H, O, B, T = 50, 32, 16, 8, 4

    key = jax.random.PRNGKey(0)
    k_param, k_inp, k_h, k_c, k_seq = jax.random.split(key, 5)
    params = init_params(k_param, VOCAB, H, O)
    prep = prepare_params(params)   # one-time: EW precompute + stack + bf16 + pad

    inp = jax.random.randint(k_inp, (B,), 0, VOCAB, dtype=jnp.int32)
    hidden = (0.1 * jax.random.normal(k_h, (1, B, H), jnp.float32),
              0.1 * jax.random.normal(k_c, (1, B, H), jnp.float32))

    # --- single-step forward (the module's exact semantics) -----------------
    out, (h1, c1) = jax.block_until_ready(
        text_lstm_forward(inp, hidden, prep, out_size=O))
    ref_out, (ref_h1, ref_c1) = _reference_forward(inp, hidden, params)
    assert jnp.allclose(out, ref_out, atol=3e-2, rtol=3e-2)
    assert jnp.allclose(h1, ref_h1, atol=3e-2, rtol=3e-2)
    assert jnp.allclose(c1, ref_c1, atol=3e-2, rtol=3e-2)

    # --- multi-step decode: T forward steps fused into one kernel launch ----
    ids_seq = jax.random.randint(k_seq, (T, B), 0, VOCAB, dtype=jnp.int32)
    logits_seq, (h_t, c_t) = jax.block_until_ready(
        text_lstm_decode(ids_seq, hidden, prep, out_size=O))
    ref_seq, (ref_ht, ref_ct) = _reference_decode(ids_seq, hidden, params)
    assert jnp.allclose(logits_seq, ref_seq, atol=5e-2, rtol=5e-2)
    assert jnp.allclose(h_t, ref_ht, atol=5e-2, rtol=5e-2)
    assert jnp.allclose(c_t, ref_ct, atol=5e-2, rtol=5e-2)

    print("KERNEL_OK")
</pallas_src>

<mosaic_0001>
module attributes {stable_mosaic.version = 11 : i64} {
  func.func @_text_lstm_kernel(%arg0: i32, %arg1: memref<1x8x1xi32, #tpu.memory_space<vmem>>, %arg2: memref<160x128xbf16, #tpu.memory_space<vmem>>, %arg3: memref<1x128xf32, #tpu.memory_space<vmem>>, %arg4: memref<32x128xbf16, #tpu.memory_space<vmem>>, %arg5: memref<1x128xf32, #tpu.memory_space<vmem>>, %arg6: memref<8x32xf32, #tpu.memory_space<vmem>>, %arg7: memref<8x32xf32, #tpu.memory_space<vmem>>, %arg8: memref<8x128xf32, #tpu.memory_space<vmem>>, %arg9: memref<8x32xf32, #tpu.memory_space<vmem>>, %arg10: memref<8x32xf32, #tpu.memory_space<vmem>>, %arg11: memref<8x32xf32, #tpu.memory_space<vmem>>, %arg12: memref<8x32xf32, #tpu.memory_space<vmem>>) attributes {dimension_semantics = [#tpu.dimension_semantics<arbitrary>], iteration_bounds = array<i64: 1>, scalar_prefetch = 0 : i64, scratch_operands = 2 : i64, tpu.core_type = #tpu.core_type<tc>, window_params = [{transform_indices = @transform_0, window_bounds = array<i64: 1, 8, 1>}, {pipeline_mode = #tpu.pipeline_mode<synchronous>, transform_indices = @transform_1, window_bounds = array<i64: 160, 128>}, {pipeline_mode = #tpu.pipeline_mode<synchronous>, transform_indices = @transform_2, window_bounds = array<i64: 1, 128>}, {pipeline_mode = #tpu.pipeline_mode<synchronous>, transform_indices = @transform_3, window_bounds = array<i64: 32, 128>}, {pipeline_mode = #tpu.pipeline_mode<synchronous>, transform_indices = @transform_4, window_bounds = array<i64: 1, 128>}, {pipeline_mode = #tpu.pipeline_mode<synchronous>, transform_indices = @transform_5, window_bounds = array<i64: 8, 32>}, {pipeline_mode = #tpu.pipeline_mode<synchronous>, transform_indices = @transform_6, window_bounds = array<i64: 8, 32>}, {transform_indices = @transform_7, window_bounds = array<i64: 8, 128>}, {pipeline_mode = #tpu.pipeline_mode<synchronous>, transform_indices = @transform_8, window_bounds = array<i64: 8, 32>}, {pipeline_mode = #tpu.pipeline_mode<synchronous>, transform_indices = @transform_9, window_bounds = array<i64: 8, 32>}]} {
    %c0_i32 = arith.constant 0 : i32
    %0 = arith.cmpi eq, %arg0, %c0_i32 : i32
    %1 = arith.extui %0 : i1 to i32
    %c0_i32_0 = arith.constant 0 : i32
    %2 = arith.cmpi ne, %1, %c0_i32_0 : i32
    scf.if %2 {
      %c0_28 = arith.constant 0 : index
      %c0_29 = arith.constant 0 : index
      %60 = vector.load %arg6[%c0_28, %c0_29] : memref<8x32xf32, #tpu.memory_space<vmem>>, vector<8x32xf32>
      %c0_30 = arith.constant 0 : index
      %c0_31 = arith.constant 0 : index
      %61 = vector.load %arg11[%c0_30, %c0_31] : memref<8x32xf32, #tpu.memory_space<vmem>>, vector<8x32xf32>
      tpu.vector_store %arg11[%c0_30, %c0_31], %60 {strides = array<i32>} : memref<8x32xf32, #tpu.memory_space<vmem>>, vector<8x32xf32>,
      %c0_32 = arith.constant 0 : index
      %c0_33 = arith.constant 0 : index
      %62 = vector.load %arg7[%c0_32, %c0_33] : memref<8x32xf32, #tpu.memory_space<vmem>>, vector<8x32xf32>
      %c0_34 = arith.constant 0 : index
      %c0_35 = arith.constant 0 : index
      %63 = vector.load %arg12[%c0_34, %c0_35] : memref<8x32xf32, #tpu.memory_space<vmem>>, vector<8x32xf32>
      tpu.vector_store %arg12[%c0_34, %c0_35], %62 {strides = array<i32>} : memref<8x32xf32, #tpu.memory_space<vmem>>, vector<8x32xf32>,
    } else {
    }
    %c0 = arith.constant 0 : index
    %c0_1 = arith.constant 0 : index
    %c0_2 = arith.constant 0 : index
    %3 = vector.load %arg1[%c0, %c0_1, %c0_2] : memref<1x8x1xi32, #tpu.memory_space<vmem>>, vector<1x8x1xi32>
    %4 = vector.shape_cast %3 : vector<1x8x1xi32> to vector<8x1xi32>
    %5 = tpu.iota {dimensions = array<i32: 1>} : vector<8x128xi32>
    %6 = vector.broadcast %4 : vector<8x1xi32> to vector<8x128xi32>
    %7 = arith.cmpi eq, %5, %6 : vector<8x128xi32>
    %8 = arith.extui %7 : vector<8x128xi1> to vector<8x128xi32>
    %9 = arith.sitofp %8 : vector<8x128xi32> to vector<8x128xf32>
    %10 = arith.truncf %9 : vector<8x128xf32> to vector<8x128xbf16>
    %c0_3 = arith.constant 0 : index
    %c0_4 = arith.constant 0 : index
    %11 = vector.load %arg11[%c0_3, %c0_4] : memref<8x32xf32, #tpu.memory_space<vmem>>, vector<8x32xf32>
    %12 = arith.truncf %11 : vector<8x32xf32> to vector<8x32xbf16>
    %13 = tpu.concatenate %10, %12 in 1 : vector<8x128xbf16>, vector<8x32xbf16> -> vector<8x160xbf16>
    %c0_5 = arith.constant 0 : index
    %c0_6 = arith.constant 0 : index
    %14 = vector.load %arg2[%c0_5, %c0_6] : memref<160x128xbf16, #tpu.memory_space<vmem>>, vector<160x128xbf16>
    %cst = arith.constant dense<0.000000e+00> : vector<8x128xf32>
    %15 = tpu.matmul %13, %14, %cst {dimension_numbers = #tpu.dot_dimension_numbers<[1], [0], [0], [1], [0, 0, 1, 1], [], []>} : vector<8x160xbf16>, vector<160x128xbf16>, vector<8x128xf32> -> vector<8x128xf32>
    %c0_7 = arith.constant 0 : index
    %c0_8 = arith.constant 0 : index
    %16 = vector.load %arg3[%c0_7, %c0_8] : memref<1x128xf32, #tpu.memory_space<vmem>>, vector<1x128xf32>
    %17 = vector.broadcast %16 : vector<1x128xf32> to vector<8x128xf32>
    %18 = arith.addf %15, %17 : vector<8x128xf32>
    %19 = tpu.iota {dimensions = array<i32: 1>} : vector<8x128xi32>
    %c64_i32 = arith.constant 64 : i32
    %20 = vector.broadcast %c64_i32 : i32 to vector<8x128xi32>
    %21 = arith.cmpi sge, %19, %20 : vector<8x128xi32>
    %c96_i32 = arith.constant 96 : i32
    %22 = vector.broadcast %c96_i32 : i32 to vector<8x128xi32>
    %23 = arith.cmpi slt, %19, %22 : vector<8x128xi32>
    %24 = arith.andi %21, %23 : vector<8x128xi1>
    %cst_9 = arith.constant 2.000000e+00 : f32
    %25 = vector.broadcast %cst_9 : f32 to vector<8x128xf32>
    %26 = arith.mulf %25, %18 : vector<8x128xf32>
    %27 = arith.select %24, %26, %18 : vector<8x128xi1>, vector<8x128xf32>
    %28 = arith.negf %27 : vector<8x128xf32>
    %29 = math.exp %28 : vector<8x128xf32>
    %cst_10 = arith.constant 1.000000e+00 : f32
    %30 = vector.broadcast %cst_10 : f32 to vector<8x128xf32>
    %31 = arith.addf %30, %29 : vector<8x128xf32>
    %32 = arith.divf %30, %31 : vector<8x128xf32>
    %cst_11 = arith.constant 2.000000e+00 : f32
    %33 = vector.broadcast %cst_11 : f32 to vector<8x128xf32>
    %34 = arith.mulf %33, %32 : vector<8x128xf32>
    %cst_12 = arith.constant 1.000000e+00 : f32
    %35 = vector.broadcast %cst_12 : f32 to vector<8x128xf32>
    %36 = arith.subf %34, %35 : vector<8x128xf32>
    %37 = arith.select %24, %36, %32 : vector<8x128xi1>, vector<8x128xf32>
    %38 = vector.extract_strided_slice %37 {offsets = [0, 0], sizes = [8, 32], strides = [1, 1]} : vector<8x128xf32> to vector<8x32xf32>
    %39 = vector.extract_strided_slice %37 {offsets = [0, 32], sizes = [8, 32], strides = [1, 1]} : vector<8x128xf32> to vector<8x32xf32>
    %40 = vector.extract_strided_slice %37 {offsets = [0, 64], sizes = [8, 32], strides = [1, 1]} : vector<8x128xf32> to vector<8x32xf32>
    %41 = vector.extract_strided_slice %37 {offsets = [0, 96], sizes = [8, 32], strides = [1, 1]} : vector<8x128xf32> to vector<8x32xf32>
    %c0_13 = arith.constant 0 : index
    %c0_14 = arith.constant 0 : index
    %42 = vector.load %arg12[%c0_13, %c0_14] : memref<8x32xf32, #tpu.memory_space<vmem>>, vector<8x32xf32>
    %43 = arith.mulf %39, %42 : vector<8x32xf32>
    %44 = arith.mulf %38, %40 : vector<8x32xf32>
    %45 = arith.addf %43, %44 : vector<8x32xf32>
    %46 = math.tanh %45 : vector<8x32xf32>
    %47 = arith.mulf %41, %46 : vector<8x32xf32>
    %c0_15 = arith.constant 0 : index
    %c0_16 = arith.constant 0 : index
    %48 = vector.load %arg12[%c0_15, %c0_16] : memref<8x32xf32, #tpu.memory_space<vmem>>, vector<8x32xf32>
    tpu.vector_store %arg12[%c0_15, %c0_16], %45 {strides = array<i32>} : memref<8x32xf32, #tpu.memory_space<vmem>>, vector<8x32xf32>,
    %c0_17 = arith.constant 0 : index
    %c0_18 = arith.constant 0 : index
    %49 = vector.load %arg11[%c0_17, %c0_18] : memref<8x32xf32, #tpu.memory_space<vmem>>, vector<8x32xf32>
    tpu.vector_store %arg11[%c0_17, %c0_18], %47 {strides = array<i32>} : memref<8x32xf32, #tpu.memory_space<vmem>>, vector<8x32xf32>,
    %50 = arith.truncf %47 : vector<8x32xf32> to vector<8x32xbf16>
    %c0_19 = arith.constant 0 : index
    %c0_20 = arith.constant 0 : index
    %51 = vector.load %arg4[%c0_19, %c0_20] : memref<32x128xbf16, #tpu.memory_space<vmem>>, vector<32x128xbf16>
    %cst_21 = arith.constant dense<0.000000e+00> : vector<8x128xf32>
    %52 = tpu.matmul %50, %51, %cst_21 {dimension_numbers = #tpu.dot_dimension_numbers<[1], [0], [0], [1], [0, 0, 1, 1], [], []>} : vector<8x32xbf16>, vector<32x128xbf16>, vector<8x128xf32> -> vector<8x128xf32>
    %c0_22 = arith.constant 0 : index
    %c0_23 = arith.constant 0 : index
    %53 = vector.load %arg5[%c0_22, %c0_23] : memref<1x128xf32, #tpu.memory_space<vmem>>, vector<1x128xf32>
    %54 = vector.broadcast %53 : vector<1x128xf32> to vector<8x128xf32>
    %55 = arith.addf %52, %54 : vector<8x128xf32>
    %c0_24 = arith.constant 0 : index
    %c0_25 = arith.constant 0 : index
    %56 = vector.load %arg8[%c0_24, %c0_25] : memref<8x128xf32, #tpu.memory_space<vmem>>, vector<8x128xf32>
    tpu.vector_store %arg8[%c0_24, %c0_25], %55 {strides = array<i32>} : memref<8x128xf32, #tpu.memory_space<vmem>>, vector<8x128xf32>,
    %c0_i32_26 = arith.constant 0 : i32
    %57 = arith.cmpi eq, %arg0, %c0_i32_26 : i32
    %58 = arith.extui %57 : i1 to i32
    %c0_i32_27 = arith.constant 0 : i32
    %59 = arith.cmpi ne, %58, %c0_i32_27 : i32
    scf.if %59 {
      %c0_28 = arith.constant 0 : index
      %c0_29 = arith.constant 0 : index
      %60 = vector.load %arg9[%c0_28, %c0_29] : memref<8x32xf32, #tpu.memory_space<vmem>>, vector<8x32xf32>
      tpu.vector_store %arg9[%c0_28, %c0_29], %47 {strides = array<i32>} : memref<8x32xf32, #tpu.memory_space<vmem>>, vector<8x32xf32>,
      %c0_30 = arith.constant 0 : index
      %c0_31 = arith.constant 0 : index
      %61 = vector.load %arg10[%c0_30, %c0_31] : memref<8x32xf32, #tpu.memory_space<vmem>>, vector<8x32xf32>
      tpu.vector_store %arg10[%c0_30, %c0_31], %45 {strides = array<i32>} : memref<8x32xf32, #tpu.memory_space<vmem>>, vector<8x32xf32>,
    } else {
    }
    return
  }
  func.func @transform_0(%arg0: i32) -> (i32, i32, i32) {
    %c0_i32 = arith.constant 0 : i32
    %c0_i32_0 = arith.constant 0 : i32
    %c0_i32_1 = arith.constant 0 : i32
    return %arg0, %c0_i32, %c0_i32_0 : i32, i32, i32
  }
  func.func @transform_1(%arg0: i32) -> (i32, i32) {
    %c0_i32 = arith.constant 0 : i32
    %c0_i32_0 = arith.constant 0 : i32
    %c0_i32_1 = arith.constant 0 : i32
    return %c0_i32, %c0_i32_0 : i32, i32
  }
  func.func @transform_2(%arg0: i32) -> (i32, i32) {
    %c0_i32 = arith.constant 0 : i32
    %c0_i32_0 = arith.constant 0 : i32
    %c0_i32_1 = arith.constant 0 : i32
    return %c0_i32, %c0_i32_0 : i32, i32
  }
  func.func @transform_3(%arg0: i32) -> (i32, i32) {
    %c0_i32 = arith.constant 0 : i32
    %c0_i32_0 = arith.constant 0 : i32
    %c0_i32_1 = arith.constant 0 : i32
    return %c0_i32, %c0_i32_0 : i32, i32
  }
  func.func @transform_4(%arg0: i32) -> (i32, i32) {
    %c0_i32 = arith.constant 0 : i32
    %c0_i32_0 = arith.constant 0 : i32
    %c0_i32_1 = arith.constant 0 : i32
    return %c0_i32, %c0_i32_0 : i32, i32
  }
  func.func @transform_5(%arg0: i32) -> (i32, i32) {
    %c0_i32 = arith.constant 0 : i32
    %c0_i32_0 = arith.constant 0 : i32
    %c0_i32_1 = arith.constant 0 : i32
    return %c0_i32, %c0_i32_0 : i32, i32
  }
  func.func @transform_6(%arg0: i32) -> (i32, i32) {
    %c0_i32 = arith.constant 0 : i32
    %c0_i32_0 = arith.constant 0 : i32
    %c0_i32_1 = arith.constant 0 : i32
    return %c0_i32, %c0_i32_0 : i32, i32
  }
  func.func @transform_7(%arg0: i32) -> (i32, i32) {
    %c0_i32 = arith.constant 0 : i32
    %c0_i32_0 = arith.constant 0 : i32
    return %arg0, %c0_i32 : i32, i32
  }
  func.func @transform_8(%arg0: i32) -> (i32, i32) {
    %c0_i32 = arith.constant 0 : i32
    %c0_i32_0 = arith.constant 0 : i32
    %c0_i32_1 = arith.constant 0 : i32
    return %c0_i32, %c0_i32_0 : i32, i32
  }
  func.func @transform_9(%arg0: i32) -> (i32, i32) {
    %c0_i32 = arith.constant 0 : i32
    %c0_i32_0 = arith.constant 0 : i32
    %c0_i32_1 = arith.constant 0 : i32
    return %c0_i32, %c0_i32_0 : i32, i32
  }
}

</mosaic_0001>

<bundles_post_ra>
// kernel: text_lstm_forward.1
= control target key start
LH: loop header
LB: loop body
LE: loop exit
PB: predicated region body
PF: predicated region fallthrough
CT: control target
= control target key end

     0   :  { %15 = vsyncpa [#allocation5], 0  ;;  %s687_s0 = inlined_call_operand.vmem [shape: s32[1,8,1], index: 0, kind: input, shape index: {}]   ;;  %s688_s1 = inlined_call_operand.hbm [shape: bf16[160,128], index: 1, kind: input, shape index: {}]   ;;  %s689_s2 = inlined_call_operand.vmem [shape: f32[1,128], index: 2, kind: input, shape index: {}]   ;;  %s690_s3 = inlined_call_operand.hbm [shape: bf16[32,128], index: 3, kind: input, shape index: {}]   ;;  %s691_s4 = inlined_call_operand.vmem [shape: f32[1,128], index: 4, kind: input, shape index: {}]   ;;  %s692_s5 = inlined_call_operand.vmem [shape: f32[8,32], index: 5, kind: input, shape index: {}]   ;;  %s693_s6 = inlined_call_operand.hbm [shape: f32[8,32], index: 6, kind: input, shape index: {}]   ;;  %s694_s7 = inlined_call_operand.vmem [shape: f32[8,128], index: 7, kind: output, shape index: {0}]   ;;  %s695_s8 = inlined_call_operand.hbm [shape: f32[8,32], index: 8, kind: output, shape index: {1}]   ;;  %s696_s9 = inlined_call_operand.hbm [shape: f32[8,32], index: 9, kind: output, shape index: {2}]  }
   0x1   :  { %16 = vsyncpa [#allocation8], 0 }
   0x2   :  { %17 = vsyncpa [#allocation6], 0 }
   0x3   :  { %18 = vsyncpa [#allocation12], 0  ;;  %s40_s11 = sshll.u32 %s690_s3, 4  ;;  %s570_s12 = smov [#allocation7]   ;;  %s41_s11 = int_to_ptr.hbm [resolvable:$true] %s40_s11 }
   0x4   :  { %s42_s13 = sshll.u32 %s570_s12, 4  ;;  %s25_s16 = sshll.u32 %s688_s1, 4  ;;  %s43_s13 = int_to_ptr.vmem [resolvable:$true] %s42_s13  ;;  %s26_s16 = int_to_ptr.hbm [resolvable:$true] %s25_s16 }
   0x5   :  { %s571_s17 = smov 64   ;;  %s572_s18 = smov 4  }
   0x6   :  { %48 = dma.hbm_to_vmem [thread:$0]  %s41_s11, 256, %s43_s13, [#allocation8], %s571_s17, %s571_s17, %s572_s18  }
   0x7   :  { %s573_s19 = smov [#allocation4]   ;;  %s58_s3 = sshll.u32 %s693_s6, 4  ;;  %s59_s3 = int_to_ptr.hbm [resolvable:$true] %s58_s3 }
   0x8   :  { %s27_s20 = sshll.u32 %s573_s19, 4  ;;  %s574_s23 = smov [#allocation9]   ;;  %s28_s20 = int_to_ptr.vmem [resolvable:$true] %s27_s20 }
   0x9   :  { %33 = dma.hbm_to_vmem [thread:$0]  %s26_s16, 1280, %s28_s20, [#allocation5], %s571_s17, %s571_s17, %s572_s18  }
   0xa   :  { %s60_s24 = sshll.u32 %s574_s23, 4  ;;  %s61_s24 = int_to_ptr.vmem [resolvable:$true] %s60_s24 }
   0xb   :  { %63 = dma.hbm_to_vmem [thread:$0]  %s59_s3, 128, %s61_s24, [#allocation8]  }
   0xc   :  { %562 = dma.done.wait [#allocation5], 1280  }
   0xd   :  { %563 = vsyncadd [#allocation5], 4294966016 }
   0xe   :  { %564 = dma.done.wait [#allocation8], 384  }
   0xf   :  { %565 = vsyncadd [#allocation8], 4294966912  ;;  %v575_v0 = vmov 0   ;;  %v86_v1 = vld [vmem:[%s687_s0] sm:$0xff]  ;;  %v417_v2 = vld [vmem:[#allocation4 + $0x38] sm:$0xff]  ;;  %vm82_vm0 = vcmask 261120   ;;  %v87_v17 = vlaneseq }
  0x10   :  { %433 = vset.pattern.permute.xlu0 %v575_v0  ;;  %186 = vmatpush.bf16.msra.mxu0 %v417_v2  ;;  %v416_v3 = vld [vmem:[#allocation4 + $0x30] sm:$0xff]  ;;  %v419_v4 = vld [vmem:[#allocation4 + $0x48] sm:$0xff]  ;;  %v84_v6 = vld [vmem:[#allocation9] sm:$0xff]  ;;  %s576_s0 = smov 32   ;;  %v577_v20 = vmov 1.0|1.0  }
  0x11   :  { %90 = vperm.xlu0 %433, %v86_v1   ;;  %v81_v5 = vld [vmem:[%s692_s5] sm:$0xff]  ;;  %205 = vmatpush.bf16.msra.mxu1 %v419_v4  ;;  %v418_v7 = vld [vmem:[#allocation4 + $0x40] sm:$0xff]  ;;  %85 = vst.msk [vmem:[#allocation3] sm:$0xff] %vm82_vm0, %v84_v6  ;;  %v415_v8 = vld [vmem:[#allocation4 + $0x28] sm:$0xff]  ;;  %v88_v18 = vand.u32 127, %v87_v17  ;;  %s579_s28 = smov [#allocation11]  }
  0x12   :  { %83 = vst.msk [vmem:[#allocation2] sm:$0xff] %vm82_vm0, %v81_v5  ;;  %v414_v9 = vld [vmem:[#allocation4 + $0x20] sm:$0xff]  ;;  %v413_v12 = vld [vmem:[#allocation4 + $0x18] sm:$0xff]  ;;  %v412_v13 = vld [vmem:[#allocation4 + $0x10] sm:$0xff]  ;;  %s335_s29 = sshll.u32 %s579_s28, 4  ;;  %s337_s11 = sshll.u32 %s696_s9, 4  ;;  %s336_s29 = int_to_ptr.vmem [resolvable:$true] %s335_s29  ;;  %s338_s11 = int_to_ptr.hbm [resolvable:$true] %s337_s11 }
  0x13   :  { %v411_v14 = vld [vmem:[#allocation4 + $0x8] sm:$0xff]  ;;  %v410_v15 = vld [vmem:[#allocation4] sm:$0xff]  ;;  %v434_v23 = vld [vmem:[%s689_s2] ss:$0 sm:$0xff]  ;;  %vm212_vm3 = vcmp.ge.s32.totalorder %v88_v18, 64  ;;  %vm213_vm4 = vcmp.lt.s32.totalorder %v88_v18, 96 }
  0x14   :  { %187 = vmatpush.bf16.msra.mxu0 %v416_v3  ;;  %vm657_vm5 = vmand %vm212_vm3, %vm213_vm4  ;;  %s578_s2 = smov 96   ;;  %v421_v54 = vld [vmem:[#allocation7 + $0x8] sm:$0xff]  ;;  %v420_v55 = vld [vmem:[#allocation7] sm:$0xff]  ;;  %s580_s12 = smov [#allocation10]  }
  0x15   :  { %206 = vmatpush.bf16.msra.mxu1 %v418_v7  ;;  %304 = vmatpush.bf16.msra.mxu2 %v421_v54  ;;  %s324_s13 = sshll.u32 %s580_s12, 4  ;;  %s326_s16 = sshll.u32 %s695_s8, 4  ;;  %v435_v62 = vld [vmem:[%s691_s4] ss:$0 sm:$0xff]  ;;  %s325_s13 = int_to_ptr.vmem [resolvable:$true] %s324_s13  ;;  %s327_s16 = int_to_ptr.hbm [resolvable:$true] %s326_s16 }
  0x18   :  { %188 = vmatpush.bf16.msra.mxu0 %v415_v8  ;;  %v239_v16 = vld [vmem:[#allocation3] sm:$0xff] }
  0x19   :  { %v96_v10 = vld [vmem:[#allocation2] sm:$0xff]  ;;  %241 = vrot.lane.b32.xlu1 %v239_v16, %s576_s0  ;;  %305 = vmatpush.bf16.msra.mxu2 %v420_v55 }
  0x1a   :  { %v97_v11 = vpack.c.bf16 %v96_v10, %v96_v10 }
  0x1c   :  { %189 = vmatpush.bf16.msra.mxu0 %v414_v9  ;;  %398 = vmatmul.msk.bf16.vlgmr.msra.gmra.mxu1 %vm82_vm0, %v97_v11 }
  0x20   :  { %190 = vmatpush.bf16.msra.mxu0 %v413_v12 }
  0x24   :  { %191 = vmatpush.bf16.msra.mxu0 %v412_v13 }
  0x28   :  { %192 = vmatpush.bf16.msra.mxu0 %v411_v14 }
  0x2c   :  { %193 = vmatpush.bf16.msra.mxu0 %v410_v15 }
  0x83   :  { %v91_v19 = vpop.permute.xlu0 %90 }
  0x84   :  { %vm92_vm1 = vcmp.eq.s32.totalorder %v88_v18, %v91_v19 }
  0x85   :  { %vm396_vm2 = vmpackc.low %vm92_vm1, %vm92_vm1 }
  0x86   :  { %397 = vmatmul.msk.bf16.vlgmr.msra.gmra.mxu0 %vm396_vm2, %v577_v20 }
  0x8b   :  { %v242_v49 = vpop.permute.xlu1 %241 }
  0x99   :  { %v208_v21 = vpop.f32.mrf.mxu1 }
  0xa1   :  { %v210_v22 = vpop.f32.mrf.mxu1 }
 0x103   :  { %v195_v24 = vpop.f32.mrf.mxu0 }
 0x104   :  { %v196_v25 = vadd.f32 %v434_v23, %v195_v24 }
 0x106   :  { %v209_v26 = vadd.f32 %v208_v21, %v196_v25 }
 0x108   :  { %v215_v28 = vmul.f32 2.0, %v209_v26 }
 0x10a   :  { %v216_v29 = vsel %vm657_vm5, %v215_v28, %v209_v26 }
 0x10b   :  { %v197_v30 = vpop.f32.mrf.mxu0  ;;  %v399_v31 = vmul.f32 -1.442695, %v216_v29 }
 0x10d   :  { %436 = vpow2.f32 %v399_v31 }
 0x113   :  { %v437_v32 = vpop.eup %436 }
 0x114   :  { %v220_v33 = vadd.f32 1.0, %v437_v32 }
 0x116   :  { %438 = vrcp.f32 %v220_v33  ;;  %v232_v37 = vand.u32 2147483648, %v220_v33  ;;  %v230_v39 = vand.u32 2147483647, %v220_v33  ;;  %vm226_vm7 = vweird.f32 %v220_v33 }
 0x118   :  { %v233_v41 = vor.u32 1.1754944e-38, %v232_v37  ;;  %vm231_vm9 = vcmp.eq.f32.partialorder %v230_v39, 8.507059e+37 }
 0x11c   :  { %v439_v34 = vpop.eup %438 }
 0x11d   :  { %v222_v35 = vmul.f32 %v439_v34, %v220_v33  ;;  %vm227_vm6 = vweird.f32 %v439_v34 }
 0x11e   :  { %vm228_vm8 = vmor %vm226_vm7, %vm227_vm6 }
 0x11f   :  { %v223_v36 = vsub.f32 1.0, %v222_v35 }
 0x121   :  { %v224_v38 = vmul.f32 %v439_v34, %v223_v36 }
 0x123   :  { %v225_v40 = vadd.f32 %v439_v34, %v224_v38 }
 0x125   :  { %v229_v42 = vsel %vm228_vm8, %v439_v34, %v225_v40 }
 0x126   :  { %v234_v43 = vsel %vm231_vm9, %v233_v41, %v229_v42 }
 0x127   :  { %v236_v44 = vmul.f32 2.0, %v234_v43 }
 0x129   :  { %v400_v45 = vadd.f32 -1.0, %v236_v44 }
 0x12b   :  { %v238_v46 = vsel %vm657_vm5, %v400_v45, %v234_v43 }
 0x12c   :  { %246 = vrot.lane.b32.xlu0 %v238_v46, %s571_s17  ;;  %v244_v50 = vmul.f32 %v242_v49, %v238_v46 }
 0x19e   :  { %v247_v47 = vpop.permute.xlu0 %246 }
 0x19f   :  { %v249_v48 = vmul.f32 %v247_v47, %v238_v46 }
 0x1a1   :  { %251 = vrot.lane.b32.xlu1 %v249_v48, %s576_s0 }
 0x213   :  { %v252_v51 = vpop.permute.xlu1 %251 }
 0x214   :  { %v254_v52 = vadd.f32 %v252_v51, %v244_v50 }
 0x216   :  { %262 = vrot.lane.b32.xlu0 %v254_v52, %s578_s2  ;;  %440 = vtanh.f32 %v254_v52 }
 0x21c   :  { %v441_v53 = vpop.eup %440 }
 0x21d   :  { %257 = vrot.lane.b32.xlu2 %v441_v53, %s571_s17 }
 0x277   :  { %v258_v56 = vpop.permute.xlu2 %257 }
 0x278   :  { %v260_v57 = vmul.f32 %v258_v56, %v238_v46 }
 0x27a   :  { %v271_v58 = vpack.c.bf16 %v260_v57, %v260_v57  ;;  %267 = vrot.lane.b32.xlu1 %v260_v57, %s576_s0 }
 0x27c   :  { %281 = vrot.lane.b32.xlu2 %v271_v58, %s576_s0 }
 0x288   :  { %v263_v59 = vpop.permute.xlu0 %262 }
 0x289   :  { %265 = vst.msk [vmem:[#allocation3] sm:$0xff] %vm82_vm0, %v263_v59 }
 0x28a   :  { %316 = vst.msk [vmem:[#allocation11] sm:$0xff] %vm82_vm0, %v263_v59 }
 0x28b   :  { %340 = dma.vmem_to_hbm [thread:$0]  %s336_s29, 128, %s338_s11, [#allocation12]  }
 0x2d6   :  { %v282_v60 = vpop.permute.xlu2 %281 }
 0x2d7   :  { %409 = vmatmul.msk.bf16.vlgmr.msra.gmra.mxu2 %vm82_vm0, %v282_v60 }
 0x2ec   :  { %v268_v61 = vpop.permute.xlu1 %267 }
 0x2ed   :  { %270 = vst.msk [vmem:[#allocation2] sm:$0xff] %vm82_vm0, %v268_v61 }
 0x2ee   :  { %315 = vst.msk [vmem:[#allocation10] sm:$0xff] %vm82_vm0, %v268_v61 }
 0x2ef   :  { %329 = dma.vmem_to_hbm [thread:$0]  %s325_s13, 128, %s327_s16, [#allocation6]  }
 0x35a   :  { %v307_v63 = vpop.f32.mrf.mxu2 }
 0x35b   :  { %v308_v0 = vadd.f32 %v435_v62, %v307_v63 }
 0x35d   :  { %311 = vst [vmem:[%s694_s7] sm:$0xff] %v308_v0 }
 0x362   :  { %v309_v1 = vpop.f32.mrf.mxu2 }
 0x363   :  { %566 = dma.done.wait [#allocation6], 128  }
 0x364   :  { %567 = vsyncadd [#allocation6], 4294967168 }
 0x365   :  { %568 = dma.done.wait [#allocation12], 128  }
 0x366   :  { %569 = vsyncadd [#allocation12], 4294967168 }
 0x367   :  { %351 = vsyncpa [#allocation5], 1 }
 0x368   :  { %352 = vsyncpa [#allocation8], 1 }
 0x369   :  { %353 = vsyncpa [#allocation6], 1 }
 0x36a   :  { %354 = vsyncpa [#allocation12], 1 }

</bundles_post_ra>
